<compile_context>
chip_gen: v5e
topology: v5e:2x2
jax: 0.10.0
libtpu: 0.0.40
codegen_flags: <defaults>
</compile_context>

<pallas_src>
import functools

import jax
import jax.numpy as jnp
from jax.experimental import pallas as pl
from jax.experimental.pallas import tpu as pltpu


def _rand_uniform_hw_kernel(seed_ref, o_ref, *, mant_bits: int):
    """TPU path: hardware PRNG; bit generation stays off the VALU."""
    # Mix the block index into the seed so each grid step (megacore shard)
    # produces an independent stream.
    mixed = seed_ref[0] + pl.program_id(0) * jnp.int32(0x632BE5AB)
    pltpu.prng_seed(mixed)
    bits = pltpu.bitcast(pltpu.prng_random_bits(o_ref.shape), jnp.uint32)
    # Top `mant_bits` bits -> k / 2^mant_bits: exactly representable in the
    # output dtype, strictly in [0, 1) (never rounds up to 1.0).
    frac = (bits >> jnp.uint32(32 - mant_bits)).astype(jnp.int32).astype(jnp.float32)
    o_ref[...] = (frac * jnp.float32(1.0 / (1 << mant_bits))).astype(o_ref.dtype)
    # Note: for bf16/f16 outputs one 32-bit draw could be amortized across
    # 2-4 elements; with the HW PRNG the draw is cheap enough to skip that.


def _rand_uniform_hash_kernel(seed_ref, o_ref, *, mant_bits: int):
    """Fallback path (CPU/interpret): counter + murmur3 fmix32, VPU-only ops."""
    tr, lanes = o_ref.shape
    shift = lanes.bit_length() - 1  # lanes == 128 -> 7
    # In-block flat index via shift|or (no vector multiplies).
    row = jax.lax.broadcasted_iota(jnp.int32, (tr, lanes), 0)
    col = jax.lax.broadcasted_iota(jnp.int32, (tr, lanes), 1)
    idx = ((row << shift) | col).astype(jnp.uint32)
    # Scalar-folded per-block / per-seed offset (unique across grid blocks).
    blk = pl.program_id(0).astype(jnp.uint32)
    seed = seed_ref[0].astype(jnp.uint32)
    base = blk * jnp.uint32(tr * lanes) + seed * jnp.uint32(0x9E3779B9)

    x = idx + base  # unique 32-bit counter per element (wraps at 2^32 elems)
    # murmur3 fmix32 finalizer.
    x = x ^ (x >> jnp.uint32(16))
    x = x * jnp.uint32(0x85EBCA6B)
    x = x ^ (x >> jnp.uint32(13))
    x = x * jnp.uint32(0xC2B2AE35)
    x = x ^ (x >> jnp.uint32(16))

    frac = (x >> jnp.uint32(32 - mant_bits)).astype(jnp.int32).astype(jnp.float32)
    o_ref[...] = (frac * jnp.float32(1.0 / (1 << mant_bits))).astype(o_ref.dtype)


def rand_like(x, seed: int = 0):
    """Pallas TPU implementation of torch.rand_like(x) for float inputs."""
    orig_shape = x.shape
    dtype = x.dtype
    if not jnp.issubdtype(dtype, jnp.floating):
        # torch.rand_like rejects integer dtypes as well.
        raise ValueError("rand_like only supports floating-point dtypes")
    n = int(x.size)

    lanes = 128
    rows = pl.cdiv(n, lanes)

    # Sublane multiple depends on element width (f32: 8, bf16/f16: 16, 8-bit: 32).
    itemsize = jnp.dtype(dtype).itemsize
    sub = {4: 8, 2: 16, 1: 32}.get(itemsize, 8)

    # Rows per block: as large as possible (fewer grid steps, bigger HBM
    # writebacks), capped at 4096 rows (2 MiB f32 block, 4 MiB double-buffered
    # — under the default scoped-VMEM limit on v5e/v6e/v7x), but aim for a
    # grid of >= 2 blocks when there is enough work so v7x's two TensorCores
    # both get a shard.
    cap = 4096
    rows_rounded = pl.cdiv(rows, sub) * sub
    if rows_rounded >= 2 * sub:
        target = pl.cdiv(pl.cdiv(rows_rounded, 2), sub) * sub
    else:
        target = rows_rounded
    tr = min(cap, target)
    rows_p = pl.cdiv(rows_rounded, tr) * tr
    grid = (rows_p // tr,)

    # Mantissa bits of the output dtype so every generated value is exact.
    mant_bits = int(min(24, jnp.finfo(dtype).nmant + 1))

    use_hw_prng = jax.default_backend() == "tpu"
    kernel = functools.partial(
        _rand_uniform_hw_kernel if use_hw_prng else _rand_uniform_hash_kernel,
        mant_bits=mant_bits,
    )

    seed_arr = jnp.array([seed], dtype=jnp.int32)

    out = pl.pallas_call(
        kernel,
        out_shape=jax.ShapeDtypeStruct((rows_p, lanes), dtype),
        grid_spec=pltpu.PrefetchScalarGridSpec(
            num_scalar_prefetch=1,            # seed lands in SMEM
            grid=grid,
            in_specs=[],
            out_specs=pl.BlockSpec((tr, lanes), lambda i, seed: (i, 0)),
        ),
        compiler_params=pltpu.CompilerParams(
            dimension_semantics=("parallel",),   # independent blocks (megacore)
        ),
    )(seed_arr)

    if rows_p * lanes == n:
        # Contiguous, element-count-preserving reshape: effectively free.
        return out.reshape(orig_shape)
    # Padded tail only exists when n doesn't tile exactly; the lazy slice costs
    # one extra HBM pass (not hit by this model's shape).
    return out.reshape(-1)[:n].reshape(orig_shape)


if __name__ == "__main__":
    key = jax.random.PRNGKey(0)
    # Small NCHW input consistent with the module's expected conv-style tensor.
    x = jax.random.normal(key, (2, 4, 16, 16), dtype=jnp.float32)

    y = rand_like(x, seed=0)
    y = jax.block_until_ready(y)

    # Sanity checks: shape/dtype match, values in [0, 1), and actually random.
    assert y.shape == x.shape, (y.shape, x.shape)
    assert y.dtype == x.dtype, (y.dtype, x.dtype)
    assert bool(jnp.all(y >= 0.0)) and bool(jnp.all(y < 1.0))
    assert float(jnp.std(y)) > 0.1  # not constant
    assert 0.3 < float(jnp.mean(y)) < 0.7  # roughly uniform

    print("KERNEL_OK")
</pallas_src>

<mosaic_0001>
module attributes {stable_mosaic.version = 11 : i64} {
  func.func @_rand_uniform_hash_kernel(%arg0: i32, %arg1: memref<1xi32, #tpu.memory_space<smem>>, %arg2: memref<8x128xf32, #tpu.memory_space<vmem>>) attributes {dimension_semantics = [#tpu.dimension_semantics<parallel>], iteration_bounds = array<i64: 2>, scalar_prefetch = 1 : i64, scratch_operands = 0 : i64, tpu.core_type = #tpu.core_type<tc>, window_params = [{transform_indices = @transform_0, window_bounds = array<i64: 8, 128>}]} {
    %0 = tpu.iota {dimensions = array<i32: 0>} : vector<8x128xi32>
    %1 = tpu.iota {dimensions = array<i32: 1>} : vector<8x128xi32>
    %c7_i32 = arith.constant 7 : i32
    %2 = vector.broadcast %c7_i32 : i32 to vector<8x128xi32>
    %3 = arith.shli %0, %2 : vector<8x128xi32>
    %4 = arith.ori %3, %1 : vector<8x128xi32>
    %c0 = arith.constant 0 : index
    %5 = memref.load %arg1[%c0] : memref<1xi32, #tpu.memory_space<smem>>
    %c1024_i32 = arith.constant 1024 : i32
    %6 = arith.muli %arg0, %c1024_i32 : i32
    %c-1640531527_i32 = arith.constant -1640531527 : i32
    %7 = arith.muli %5, %c-1640531527_i32 : i32
    %8 = arith.addi %6, %7 : i32
    %9 = vector.broadcast %8 : i32 to vector<8x128xi32>
    %10 = arith.addi %4, %9 : vector<8x128xi32>
    %c16_i32 = arith.constant 16 : i32
    %11 = vector.broadcast %c16_i32 : i32 to vector<8x128xi32>
    %12 = arith.shrui %10, %11 : vector<8x128xi32>
    %13 = arith.xori %10, %12 : vector<8x128xi32>
    %c-2048144789_i32 = arith.constant -2048144789 : i32
    %14 = vector.broadcast %c-2048144789_i32 : i32 to vector<8x128xi32>
    %15 = arith.muli %13, %14 : vector<8x128xi32>
    %c13_i32 = arith.constant 13 : i32
    %16 = vector.broadcast %c13_i32 : i32 to vector<8x128xi32>
    %17 = arith.shrui %15, %16 : vector<8x128xi32>
    %18 = arith.xori %15, %17 : vector<8x128xi32>
    %c-1028477387_i32 = arith.constant -1028477387 : i32
    %19 = vector.broadcast %c-1028477387_i32 : i32 to vector<8x128xi32>
    %20 = arith.muli %18, %19 : vector<8x128xi32>
    %c16_i32_0 = arith.constant 16 : i32
    %21 = vector.broadcast %c16_i32_0 : i32 to vector<8x128xi32>
    %22 = arith.shrui %20, %21 : vector<8x128xi32>
    %23 = arith.xori %20, %22 : vector<8x128xi32>
    %c8_i32 = arith.constant 8 : i32
    %24 = vector.broadcast %c8_i32 : i32 to vector<8x128xi32>
    %25 = arith.shrui %23, %24 : vector<8x128xi32>
    %26 = arith.sitofp %25 : vector<8x128xi32> to vector<8x128xf32>
    %cst = arith.constant 5.96046448E-8 : f32
    %27 = vector.broadcast %cst : f32 to vector<8x128xf32>
    %28 = arith.mulf %26, %27 : vector<8x128xf32>
    %c0_1 = arith.constant 0 : index
    %c0_2 = arith.constant 0 : index
    %29 = vector.load %arg2[%c0_1, %c0_2] : memref<8x128xf32, #tpu.memory_space<vmem>>, vector<8x128xf32>
    tpu.vector_store %arg2[%c0_1, %c0_2], %28 {strides = array<i32>} : memref<8x128xf32, #tpu.memory_space<vmem>>, vector<8x128xf32>,
    return
  }
  func.func @transform_0(%arg0: i32, %arg1: memref<1xi32, #tpu.memory_space<smem>>) -> (i32, i32) {
    %c0_i32 = arith.constant 0 : i32
    %c0_i32_0 = arith.constant 0 : i32
    return %arg0, %c0_i32 : i32, i32
  }
}

</mosaic_0001>

<bundles_post_ra>
// kernel: tpu_custom_call.1
= control target key start
LH: loop header
LB: loop body
LE: loop exit
PB: predicated region body
PF: predicated region fallthrough
CT: control target
= control target key end

     0   :  { %s307_s0 = inlined_call_operand.<no memory space> [shape: s32[1], index: 0, kind: input, shape index: {}]   ;;  %s308_s1 = inlined_call_operand.hbm [shape: f32[16,128], index: 1, kind: output, shape index: {}]  }
   0x1   :  { %6 = sst [smem:[#allocation3]] %s307_s0 }
   0x2   :  { %7 = vsyncpa [#allocation5], 0 }
   0x3   :  { %9 = vsyncpa [#allocation5 + $0x1], 0  ;;  %s240_s8 = smov 0   ;;  %s242_s9 = smov 0  }
   0x4   :  { %s244_s10 = smov 0  }
   0x5 LB: > { %s131_s0 = sadd.s32 4294967295, %s225_s10   ;;  %s257_s11 = sadd.s32 1, %s225_s10   ;;  %s225_s10 = sphi %s244_s10, %s313_s10   ;;  %s221_s9 = sphi %s242_s9, %s312_s9   ;;  %s217_s8 = sphi %s240_s8, %s311_s8  }
   0x6   : > { %s18_s12 = ssub.s32 %s225_s10, %s257_s11  ;;  %s21_s13 = sadd.s32 1, %s221_s9 }
   0x7   : > { %p19_p0 = scmp.eq.s32.totalorder %s18_s12, 0  ;;  %p132_p1 = scmp.ne.s32.totalorder %s18_s12, 0 }
   0x8   : > { %p25_p2 = scmp.eq.s32.totalorder %s225_s10, 1  ;;  %p30_p3 = scmp.ne.s32.totalorder %s221_s9, %s217_s8 }
   0x9   : > { %s266_s14 = scalar_select %p19_p0, %s221_s9, %s21_s13  }
   0xa   : > { %p268_p4 = por %p132_p1, %p25_p2  ;;  %p31_p5 = scmp.eq.s32.totalorder %s131_s0, 1 }
   0xb   : > { %p133_p7 = scmp.ge.s32.totalorder %s225_s10, 2 }
   0xc   : > { %p272_p6 = por %p31_p5, %p30_p3  ;;  %s54_s17 = sld [smem:[#allocation3]] (!%p133_p7) }
   0xd   : > { %40 = sbr.rel (%p133_p7) target bundleno = 53 (0x35), region = 12  ;;  %s135_s18 = sshll.u32 (!%p133_p7), %s225_s10, 10 }
   0xe   : > { %s45_s21 = sand.u32 (!%p133_p7), 1, %s221_s9   ;;  %s137_s23 = sshll.u32 (!%p133_p7), %s225_s10, 3 }
   0xf   : > { %s134_s22 = sshll.u32 (!%p133_p7), %s45_s21, 3  ;;  %s83_s26 = scalar_lea.hbm (!%p133_p7), %s308_s1, %s137_s23 }
  0x10   : > { %s47_s27 = scalar_lea.vmem (!%p133_p7), [#allocation4], %s134_s22  ;;  %s87_s29 = sshll.u32 (!%p133_p7), %s83_s26, 4  ;;  %s88_s29 = int_to_ptr.hbm [resolvable:$true] %s87_s29 }
  0x11   : > { %s85_s28 = sshll.u32 (!%p133_p7), %s47_s27, 4  ;;  %s73_s30 = scalar_lea.sflag (!%p133_p7), [#allocation5], %s45_s21  ;;  %s86_s28 = int_to_ptr.vmem [resolvable:$true] %s85_s28 }
  0x12   : > { %v48_v0 = vlaneseq  ;;  %s56_s19 = smul.u32 2654435769, %s54_s17  ;;  %s185_s2 = sshra.s32 %s88_s29, 4  ;;  %s186_s2 = int_to_ptr.hbm [resolvable:$true] %s185_s2 }
  0x13   : > { %s187_s3 = scalar_lea.hbm %s186_s2, 8  ;;  %s191_s6 = scalar_lea.hbm %s308_s1, 16 }
  0x14   : > { %v49_v1 = vshrl.u32 %v48_v0, 7  ;;  %v51_v2 = vand.u32 127, %v48_v0  ;;  %s57_s20 = sadd.s32 %s135_s18, %s56_s19  ;;  %p188_p8 = scmp.ne.s32.totalorder %s186_s2, %s187_s3 }
  0x15   : > { %v58_v5 = vstv %s57_s20  ;;  %p192_p11 = scmp.lt.s32.totalorder %s186_s2, %s308_s1  ;;  %p193_p12 = scmp.lt.s32.totalorder %s191_s6, %s187_s3 }
  0x16   : > { %v52_v3 = vshll.u32 %v49_v1, 7  ;;  %p189_p9 = pnand %p188_p8, %p268_p4 }
  0x17   : > { %p194_p13 = por %p193_p12, %p192_p11 }
  0x18   : > { %v53_v4 = vor.u32 %v52_v3, %v51_v2  ;;  %p190_p10 = pneg %p189_p9 }
  0x1a   : > { %v59_v6 = vadd.s32 %v58_v5, %v53_v4  ;;  %p195_p0 = pnand %p194_p13, %p190_p10 }
  0x1c   : > { %v60_v7 = vshrl.u32 %v59_v6, 16 }
  0x1e   : > { %v61_v8 = vxor.u32 %v60_v7, %v59_v6 }
  0x20   : > { %v62_v9 = vmul.u32 2246822507, %v61_v8 }
  0x22   : > { %v63_v10 = vshrl.u32 %v62_v9, 13 }
  0x24   : > { %v64_v11 = vxor.u32 %v63_v10, %v62_v9 }
  0x26   : > { %v65_v12 = vmul.u32 3266489909, %v64_v11 }
  0x28   : > { %v66_v13 = vshrl.u32 %v65_v12, 16 }
  0x2a   : > { %v67_v14 = vxor.u32 %v66_v13, %v65_v12 }
  0x2c   : > { %v68_v15 = vshrl.u32 %v67_v14, 8 }
  0x2e   : > { %v69_v16 = vcvt.s32.f32 %v68_v15 }
  0x30   : > { %v70_v17 = vmul.f32 5.9604645e-08, %v69_v16 }
  0x32   : > { %71 = vst [vmem:[%s47_s27] sm:$0xff] %v70_v17 }
  0x33   : > { %198 = shalt.err (!%p195_p0)
}
  0x34   : > { %140 = dma.vmem_to_hbm [thread:$0]  (%p268_p4), %s86_s28, 128, %s88_s29, %s73_s30  }
  0x35 PF: > { %p146_p1 = scmp.ge.s32.totalorder %s225_s10, 1  ;;  %s99_s12 = sand.u32 1, %s217_s8  }
  0x36   : > { %s100_s13 = scalar_lea.sflag [#allocation5], %s99_s12 }
  0x37   : > { %p143_p2 = pnand %p146_p1, %p272_p6 }
  0x39   : > { %p144_p3 = pneg %p143_p2 }
  0x3b   : > { %212 = dma.done.wait (%p144_p3), %s100_s13, 128  }
  0x3c   : > { %214 = vsyncadd (%p144_p3), %s100_s13, 4294967168  ;;  %p12_p5 = scmp.ge.s32.totalorder %s257_s11, 3   ;;  %s311_s8 = smov %s221_s9 }
  0x3d   : > { %s312_s9 = smov %s266_s14  ;;  %s313_s10 = smov %s257_s11 }
  0x3e   :  { %14 = sbr.rel (!%p12_p5) target bundleno = 5 (0x5), region = 44 }
  0x43   :  { %106 = vsyncpa [#allocation5], 1 }
  0x44   :  { %108 = vsyncpa [#allocation5 + $0x1], 1 }

</bundles_post_ra>
